<compile_context>
chip_gen: v5e
topology: v5e:2x2
jax: 0.10.0
libtpu: 0.0.40
codegen_flags: <defaults>
</compile_context>

<pallas_src>
import functools

import jax
import jax.numpy as jnp
from jax.experimental import pallas as pl
from jax.experimental.pallas import tpu as pltpu


def _dsc_kernel(x_ref, wd_ref, bd_ref, wp_ref, bp_ref, o_ref, dw_ref, *, W, HW):
    # x_ref : (1, C, Pin)  zero-padded, flattened input (one batch element)
    # wd_ref: (9, C, 1)    depthwise 3x3 taps, one (C, 1) column per tap
    # bd_ref: (C, 1)       depthwise bias
    # wp_ref: (To, C)      pointwise weight tile
    # bp_ref: (To, 1)      pointwise bias tile
    # o_ref : (1, To, HW)  output tile (full-width rows; halo cropped outside)
    # dw_ref: (C, HW) f32  VMEM scratch holding the depthwise result
    C = dw_ref.shape[0]

    # Depthwise 3x3: computed once per batch element, reused for every O tile.
    @pl.when(pl.program_id(1) == 0)
    def _():
        acc = jnp.broadcast_to(bd_ref[...].astype(jnp.float32), (C, HW))
        for ki in range(3):
            for kj in range(3):
                off = ki * W + kj
                tap = wd_ref[ki * 3 + kj].astype(jnp.float32)       # (C, 1)
                xs = x_ref[0, :, off:off + HW].astype(jnp.float32)  # (C, HW)
                acc = acc + xs * tap
        dw_ref[...] = acc

    # Pointwise 1x1: (To, C) x (C, HW) on the MXU, plus bias.
    out = jnp.dot(wp_ref[...].astype(jnp.float32), dw_ref[...],
                  preferred_element_type=jnp.float32)
    out = out + bp_ref[...].astype(jnp.float32)
    o_ref[0] = out.astype(o_ref.dtype)


def _pick_out_tile(total, target=256):
    """Largest multiple-of-8 divisor of `total` that is <= target (or total)."""
    if total <= target:
        return total
    t = target - (target % 8)
    while t >= 8:
        if total % t == 0:
            return t
        t -= 8
    return total


def dsc_conv2d_pallas(x, dw_weight, dw_bias, pw_weight, pw_bias):
    """Depthwise-separable conv: 3x3 depthwise (VALID) + 1x1 pointwise.

    x         : (N, C, H, W)
    dw_weight : (C, 1, 3, 3)   == Conv2d(C, C, 3, groups=C).weight
    dw_bias   : (C,)
    pw_weight : (O, C, 1, 1)   == Conv2d(C, O, 1).weight
    pw_bias   : (O,)
    returns   : (N, O, H-2, W-2)
    """
    N, C, H, W = x.shape
    O = pw_weight.shape[0]
    HW = H * W
    Ho, Wo = H - 2, W - 2

    # Flatten spatial; pad so every 3x3 tap offset stays in bounds, rounded up
    # to a multiple of 128 to keep the input slab lane-aligned.
    pin = HW + 2 * W + 2
    Pin = ((pin + 127) // 128) * 128
    x3 = jnp.pad(x.reshape(N, C, HW), ((0, 0), (0, 0), (0, Pin - HW)))

    wd = jnp.transpose(dw_weight.reshape(C, 9)).reshape(9, C, 1)
    bd = dw_bias.reshape(C, 1)
    wp = pw_weight.reshape(O, C)
    bp = pw_bias.reshape(O, 1)

    To = _pick_out_tile(O)
    kernel = functools.partial(_dsc_kernel, W=W, HW=HW)

    out = pl.pallas_call(
        kernel,
        out_shape=jax.ShapeDtypeStruct((N, O, HW), x.dtype),
        grid_spec=pltpu.PrefetchScalarGridSpec(
            num_scalar_prefetch=0,
            grid=(N, O // To),
            in_specs=[
                pl.BlockSpec((1, C, Pin), lambda n, o: (n, 0, 0)),   # x slab
                pl.BlockSpec((9, C, 1), lambda n, o: (0, 0, 0)),     # dw taps
                pl.BlockSpec((C, 1), lambda n, o: (0, 0)),           # dw bias
                pl.BlockSpec((To, C), lambda n, o: (o, 0)),          # pw weight
                pl.BlockSpec((To, 1), lambda n, o: (o, 0)),          # pw bias
            ],
            out_specs=pl.BlockSpec((1, To, HW), lambda n, o: (n, o, 0)),
            scratch_shapes=[pltpu.VMEM((C, HW), jnp.float32)],
        ),
        compiler_params=pltpu.CompilerParams(
            dimension_semantics=("parallel", "arbitrary")),
    )(x3, wd, bd, wp, bp)

    # Crop the 2-pixel halo (garbage columns/rows) with a free XLA slice.
    return out.reshape(N, O, H, W)[:, :, :Ho, :Wo]


def dsc_conv2d_reference(x, dw_weight, dw_bias, pw_weight, pw_bias):
    """Pure-JAX reference matching PyTorch DSCConv2d forward."""
    C = x.shape[1]
    y = jax.lax.conv_general_dilated(
        x, dw_weight, window_strides=(1, 1), padding="VALID",
        dimension_numbers=("NCHW", "OIHW", "NCHW"), feature_group_count=C)
    y = y + dw_bias[None, :, None, None]
    z = jax.lax.conv_general_dilated(
        y, pw_weight, window_strides=(1, 1), padding="VALID",
        dimension_numbers=("NCHW", "OIHW", "NCHW"))
    return z + pw_bias[None, :, None, None]


if __name__ == "__main__":
    # Small deterministic shapes consistent with the module.
    N, C, H, W = 2, 4, 16, 16   # batch, filters, spatial
    O = 8                       # out_filters

    key = jax.random.PRNGKey(0)
    kx, kwd, kbd, kwp, kbp = jax.random.split(key, 5)

    x = jax.random.normal(kx, (N, C, H, W), dtype=jnp.float32)
    dw_weight = jax.random.normal(kwd, (C, 1, 3, 3), dtype=jnp.float32) * 0.2
    dw_bias = jax.random.normal(kbd, (C,), dtype=jnp.float32) * 0.1
    pw_weight = jax.random.normal(kwp, (O, C, 1, 1), dtype=jnp.float32) * 0.2
    pw_bias = jax.random.normal(kbp, (O,), dtype=jnp.float32) * 0.1

    out = dsc_conv2d_pallas(x, dw_weight, dw_bias, pw_weight, pw_bias)
    out = jax.block_until_ready(out)

    ref = dsc_conv2d_reference(x, dw_weight, dw_bias, pw_weight, pw_bias)
    assert out.shape == (N, O, H - 2, W - 2)
    assert jnp.allclose(out, ref, atol=1e-4, rtol=1e-4), "mismatch vs reference"

    print("KERNEL_OK")
</pallas_src>

<mosaic_0001>
module attributes {stable_mosaic.version = 11 : i64} {
  func.func @_dsc_kernel(%arg0: i32, %arg1: i32, %arg2: memref<1x4x384xf32, #tpu.memory_space<vmem>>, %arg3: memref<9x4x1xf32, #tpu.memory_space<vmem>>, %arg4: memref<4x1xf32, #tpu.memory_space<vmem>>, %arg5: memref<8x4xf32, #tpu.memory_space<vmem>>, %arg6: memref<8x1xf32, #tpu.memory_space<vmem>>, %arg7: memref<1x8x256xf32, #tpu.memory_space<vmem>>, %arg8: memref<4x256xf32, #tpu.memory_space<vmem>>) attributes {dimension_semantics = [#tpu.dimension_semantics<parallel>, #tpu.dimension_semantics<arbitrary>], iteration_bounds = array<i64: 2, 1>, scalar_prefetch = 0 : i64, scratch_operands = 1 : i64, tpu.core_type = #tpu.core_type<tc>, window_params = [{transform_indices = @transform_0, window_bounds = array<i64: 1, 4, 384>}, {pipeline_mode = #tpu.pipeline_mode<synchronous>, transform_indices = @transform_1, window_bounds = array<i64: 9, 4, 1>}, {pipeline_mode = #tpu.pipeline_mode<synchronous>, transform_indices = @transform_2, window_bounds = array<i64: 4, 1>}, {transform_indices = @transform_3, window_bounds = array<i64: 8, 4>}, {transform_indices = @transform_4, window_bounds = array<i64: 8, 1>}, {transform_indices = @transform_5, window_bounds = array<i64: 1, 8, 256>}]} {
    %c0_i32 = arith.constant 0 : i32
    %0 = arith.cmpi eq, %arg1, %c0_i32 : i32
    %1 = arith.extui %0 : i1 to i32
    %c0_i32_0 = arith.constant 0 : i32
    %2 = arith.cmpi ne, %1, %c0_i32_0 : i32
    scf.if %2 {
      %c0_9 = arith.constant 0 : index
      %c0_10 = arith.constant 0 : index
      %12 = vector.load %arg4[%c0_9, %c0_10] : memref<4x1xf32, #tpu.memory_space<vmem>>, vector<4x1xf32>
      %13 = vector.shape_cast %12 : vector<4x1xf32> to vector<4x1xf32>
      %14 = vector.broadcast %13 : vector<4x1xf32> to vector<4x256xf32>
      %c0_11 = arith.constant 0 : index
      %c0_12 = arith.constant 0 : index
      %c0_13 = arith.constant 0 : index
      %15 = vector.load %arg3[%c0_11, %c0_12, %c0_13] : memref<9x4x1xf32, #tpu.memory_space<vmem>>, vector<1x4x1xf32>
      %16 = vector.shape_cast %15 : vector<1x4x1xf32> to vector<4x1xf32>
      %c0_14 = arith.constant 0 : index
      %c0_15 = arith.constant 0 : index
      %c0_16 = arith.constant 0 : index
      %17 = vector.load %arg2[%c0_14, %c0_15, %c0_16] : memref<1x4x384xf32, #tpu.memory_space<vmem>>, vector<1x4x256xf32>
      %18 = vector.shape_cast %17 : vector<1x4x256xf32> to vector<4x256xf32>
      %19 = vector.broadcast %16 : vector<4x1xf32> to vector<4x256xf32>
      %20 = arith.mulf %18, %19 : vector<4x256xf32>
      %21 = arith.addf %14, %20 : vector<4x256xf32>
      %c1 = arith.constant 1 : index
      %c0_17 = arith.constant 0 : index
      %c0_18 = arith.constant 0 : index
      %22 = vector.load %arg3[%c1, %c0_17, %c0_18] : memref<9x4x1xf32, #tpu.memory_space<vmem>>, vector<1x4x1xf32>
      %23 = vector.shape_cast %22 : vector<1x4x1xf32> to vector<4x1xf32>
      %c0_19 = arith.constant 0 : index
      %c0_20 = arith.constant 0 : index
      %c1_21 = arith.constant 1 : index
      %24 = vector.load %arg2[%c0_19, %c0_20, %c1_21] : memref<1x4x384xf32, #tpu.memory_space<vmem>>, vector<1x4x256xf32>
      %25 = vector.shape_cast %24 : vector<1x4x256xf32> to vector<4x256xf32>
      %26 = vector.broadcast %23 : vector<4x1xf32> to vector<4x256xf32>
      %27 = arith.mulf %25, %26 : vector<4x256xf32>
      %28 = arith.addf %21, %27 : vector<4x256xf32>
      %c2 = arith.constant 2 : index
      %c0_22 = arith.constant 0 : index
      %c0_23 = arith.constant 0 : index
      %29 = vector.load %arg3[%c2, %c0_22, %c0_23] : memref<9x4x1xf32, #tpu.memory_space<vmem>>, vector<1x4x1xf32>
      %30 = vector.shape_cast %29 : vector<1x4x1xf32> to vector<4x1xf32>
      %c0_24 = arith.constant 0 : index
      %c0_25 = arith.constant 0 : index
      %c2_26 = arith.constant 2 : index
      %31 = vector.load %arg2[%c0_24, %c0_25, %c2_26] : memref<1x4x384xf32, #tpu.memory_space<vmem>>, vector<1x4x256xf32>
      %32 = vector.shape_cast %31 : vector<1x4x256xf32> to vector<4x256xf32>
      %33 = vector.broadcast %30 : vector<4x1xf32> to vector<4x256xf32>
      %34 = arith.mulf %32, %33 : vector<4x256xf32>
      %35 = arith.addf %28, %34 : vector<4x256xf32>
      %c3 = arith.constant 3 : index
      %c0_27 = arith.constant 0 : index
      %c0_28 = arith.constant 0 : index
      %36 = vector.load %arg3[%c3, %c0_27, %c0_28] : memref<9x4x1xf32, #tpu.memory_space<vmem>>, vector<1x4x1xf32>
      %37 = vector.shape_cast %36 : vector<1x4x1xf32> to vector<4x1xf32>
      %c0_29 = arith.constant 0 : index
      %c0_30 = arith.constant 0 : index
      %c16 = arith.constant 16 : index
      %38 = vector.load %arg2[%c0_29, %c0_30, %c16] : memref<1x4x384xf32, #tpu.memory_space<vmem>>, vector<1x4x256xf32>
      %39 = vector.shape_cast %38 : vector<1x4x256xf32> to vector<4x256xf32>
      %40 = vector.broadcast %37 : vector<4x1xf32> to vector<4x256xf32>
      %41 = arith.mulf %39, %40 : vector<4x256xf32>
      %42 = arith.addf %35, %41 : vector<4x256xf32>
      %c4 = arith.constant 4 : index
      %c0_31 = arith.constant 0 : index
      %c0_32 = arith.constant 0 : index
      %43 = vector.load %arg3[%c4, %c0_31, %c0_32] : memref<9x4x1xf32, #tpu.memory_space<vmem>>, vector<1x4x1xf32>
      %44 = vector.shape_cast %43 : vector<1x4x1xf32> to vector<4x1xf32>
      %c0_33 = arith.constant 0 : index
      %c0_34 = arith.constant 0 : index
      %c17 = arith.constant 17 : index
      %45 = vector.load %arg2[%c0_33, %c0_34, %c17] : memref<1x4x384xf32, #tpu.memory_space<vmem>>, vector<1x4x256xf32>
      %46 = vector.shape_cast %45 : vector<1x4x256xf32> to vector<4x256xf32>
      %47 = vector.broadcast %44 : vector<4x1xf32> to vector<4x256xf32>
      %48 = arith.mulf %46, %47 : vector<4x256xf32>
      %49 = arith.addf %42, %48 : vector<4x256xf32>
      %c5 = arith.constant 5 : index
      %c0_35 = arith.constant 0 : index
      %c0_36 = arith.constant 0 : index
      %50 = vector.load %arg3[%c5, %c0_35, %c0_36] : memref<9x4x1xf32, #tpu.memory_space<vmem>>, vector<1x4x1xf32>
      %51 = vector.shape_cast %50 : vector<1x4x1xf32> to vector<4x1xf32>
      %c0_37 = arith.constant 0 : index
      %c0_38 = arith.constant 0 : index
      %c18 = arith.constant 18 : index
      %52 = vector.load %arg2[%c0_37, %c0_38, %c18] : memref<1x4x384xf32, #tpu.memory_space<vmem>>, vector<1x4x256xf32>
      %53 = vector.shape_cast %52 : vector<1x4x256xf32> to vector<4x256xf32>
      %54 = vector.broadcast %51 : vector<4x1xf32> to vector<4x256xf32>
      %55 = arith.mulf %53, %54 : vector<4x256xf32>
      %56 = arith.addf %49, %55 : vector<4x256xf32>
      %c6 = arith.constant 6 : index
      %c0_39 = arith.constant 0 : index
      %c0_40 = arith.constant 0 : index
      %57 = vector.load %arg3[%c6, %c0_39, %c0_40] : memref<9x4x1xf32, #tpu.memory_space<vmem>>, vector<1x4x1xf32>
      %58 = vector.shape_cast %57 : vector<1x4x1xf32> to vector<4x1xf32>
      %c0_41 = arith.constant 0 : index
      %c0_42 = arith.constant 0 : index
      %c32 = arith.constant 32 : index
      %59 = vector.load %arg2[%c0_41, %c0_42, %c32] : memref<1x4x384xf32, #tpu.memory_space<vmem>>, vector<1x4x256xf32>
      %60 = vector.shape_cast %59 : vector<1x4x256xf32> to vector<4x256xf32>
      %61 = vector.broadcast %58 : vector<4x1xf32> to vector<4x256xf32>
      %62 = arith.mulf %60, %61 : vector<4x256xf32>
      %63 = arith.addf %56, %62 : vector<4x256xf32>
      %c7 = arith.constant 7 : index
      %c0_43 = arith.constant 0 : index
      %c0_44 = arith.constant 0 : index
      %64 = vector.load %arg3[%c7, %c0_43, %c0_44] : memref<9x4x1xf32, #tpu.memory_space<vmem>>, vector<1x4x1xf32>
      %65 = vector.shape_cast %64 : vector<1x4x1xf32> to vector<4x1xf32>
      %c0_45 = arith.constant 0 : index
      %c0_46 = arith.constant 0 : index
      %c33 = arith.constant 33 : index
      %66 = vector.load %arg2[%c0_45, %c0_46, %c33] : memref<1x4x384xf32, #tpu.memory_space<vmem>>, vector<1x4x256xf32>
      %67 = vector.shape_cast %66 : vector<1x4x256xf32> to vector<4x256xf32>
      %68 = vector.broadcast %65 : vector<4x1xf32> to vector<4x256xf32>
      %69 = arith.mulf %67, %68 : vector<4x256xf32>
      %70 = arith.addf %63, %69 : vector<4x256xf32>
      %c8 = arith.constant 8 : index
      %c0_47 = arith.constant 0 : index
      %c0_48 = arith.constant 0 : index
      %71 = vector.load %arg3[%c8, %c0_47, %c0_48] : memref<9x4x1xf32, #tpu.memory_space<vmem>>, vector<1x4x1xf32>
      %72 = vector.shape_cast %71 : vector<1x4x1xf32> to vector<4x1xf32>
      %c0_49 = arith.constant 0 : index
      %c0_50 = arith.constant 0 : index
      %c34 = arith.constant 34 : index
      %73 = vector.load %arg2[%c0_49, %c0_50, %c34] : memref<1x4x384xf32, #tpu.memory_space<vmem>>, vector<1x4x256xf32>
      %74 = vector.shape_cast %73 : vector<1x4x256xf32> to vector<4x256xf32>
      %75 = vector.broadcast %72 : vector<4x1xf32> to vector<4x256xf32>
      %76 = arith.mulf %74, %75 : vector<4x256xf32>
      %77 = arith.addf %70, %76 : vector<4x256xf32>
      %c0_51 = arith.constant 0 : index
      %c0_52 = arith.constant 0 : index
      %78 = vector.load %arg8[%c0_51, %c0_52] : memref<4x256xf32, #tpu.memory_space<vmem>>, vector<4x256xf32>
      tpu.vector_store %arg8[%c0_51, %c0_52], %77 {strides = array<i32>} : memref<4x256xf32, #tpu.memory_space<vmem>>, vector<4x256xf32>,
    } else {
    }
    %c0 = arith.constant 0 : index
    %c0_1 = arith.constant 0 : index
    %3 = vector.load %arg5[%c0, %c0_1] : memref<8x4xf32, #tpu.memory_space<vmem>>, vector<8x4xf32>
    %c0_2 = arith.constant 0 : index
    %c0_3 = arith.constant 0 : index
    %4 = vector.load %arg8[%c0_2, %c0_3] : memref<4x256xf32, #tpu.memory_space<vmem>>, vector<4x256xf32>
    %cst = arith.constant dense<0.000000e+00> : vector<8x256xf32>
    %5 = tpu.matmul %3, %4, %cst {dimension_numbers = #tpu.dot_dimension_numbers<[1], [0], [0], [1], [0, 0, 1, 1], [], []>} : vector<8x4xf32>, vector<4x256xf32>, vector<8x256xf32> -> vector<8x256xf32>
    %c0_4 = arith.constant 0 : index
    %c0_5 = arith.constant 0 : index
    %6 = vector.load %arg6[%c0_4, %c0_5] : memref<8x1xf32, #tpu.memory_space<vmem>>, vector<8x1xf32>
    %7 = vector.broadcast %6 : vector<8x1xf32> to vector<8x256xf32>
    %8 = arith.addf %5, %7 : vector<8x256xf32>
    %c0_6 = arith.constant 0 : index
    %c0_7 = arith.constant 0 : index
    %c0_8 = arith.constant 0 : index
    %9 = vector.load %arg7[%c0_6, %c0_7, %c0_8] : memref<1x8x256xf32, #tpu.memory_space<vmem>>, vector<1x8x256xf32>
    %10 = vector.shape_cast %9 : vector<1x8x256xf32> to vector<8x256xf32>
    %11 = vector.shape_cast %8 : vector<8x256xf32> to vector<1x8x256xf32>
    tpu.vector_store %arg7[%c0_6, %c0_7, %c0_8], %11 {strides = array<i32>} : memref<1x8x256xf32, #tpu.memory_space<vmem>>, vector<1x8x256xf32>,
    return
  }
  func.func @transform_0(%arg0: i32, %arg1: i32) -> (i32, i32, i32) {
    %c0_i32 = arith.constant 0 : i32
    %c0_i32_0 = arith.constant 0 : i32
    %c0_i32_1 = arith.constant 0 : i32
    return %arg0, %c0_i32, %c0_i32_0 : i32, i32, i32
  }
  func.func @transform_1(%arg0: i32, %arg1: i32) -> (i32, i32, i32) {
    %c0_i32 = arith.constant 0 : i32
    %c0_i32_0 = arith.constant 0 : i32
    %c0_i32_1 = arith.constant 0 : i32
    %c0_i32_2 = arith.constant 0 : i32
    return %c0_i32, %c0_i32_0, %c0_i32_1 : i32, i32, i32
  }
  func.func @transform_2(%arg0: i32, %arg1: i32) -> (i32, i32) {
    %c0_i32 = arith.constant 0 : i32
    %c0_i32_0 = arith.constant 0 : i32
    %c0_i32_1 = arith.constant 0 : i32
    return %c0_i32, %c0_i32_0 : i32, i32
  }
  func.func @transform_3(%arg0: i32, %arg1: i32) -> (i32, i32) {
    %c0_i32 = arith.constant 0 : i32
    %c0_i32_0 = arith.constant 0 : i32
    return %arg1, %c0_i32 : i32, i32
  }
  func.func @transform_4(%arg0: i32, %arg1: i32) -> (i32, i32) {
    %c0_i32 = arith.constant 0 : i32
    %c0_i32_0 = arith.constant 0 : i32
    return %arg1, %c0_i32 : i32, i32
  }
  func.func @transform_5(%arg0: i32, %arg1: i32) -> (i32, i32, i32) {
    %c0_i32 = arith.constant 0 : i32
    %c0_i32_0 = arith.constant 0 : i32
    return %arg0, %arg1, %c0_i32 : i32, i32, i32
  }
}

</mosaic_0001>

<bundles_post_ra>
// kernel: tpu_custom_call.1
= control target key start
LH: loop header
LB: loop body
LE: loop exit
PB: predicated region body
PF: predicated region fallthrough
CT: control target
= control target key end

     0   :  { %10 = vsyncpa [#allocation4], 0  ;;  %s1175_s0 = inlined_call_operand.vmem [shape: f32[2,4,384], index: 0, kind: input, shape index: {}]   ;;  %s1176_s1 = inlined_call_operand.vmem [shape: f32[9,4,1], index: 1, kind: input, shape index: {}]   ;;  %s1177_s2 = inlined_call_operand.vmem [shape: f32[4,1], index: 2, kind: input, shape index: {}]   ;;  %s1178_s3 = inlined_call_operand.vmem [shape: f32[8,4], index: 3, kind: input, shape index: {}]   ;;  %s1179_s4 = inlined_call_operand.vmem [shape: f32[8,1], index: 4, kind: input, shape index: {}]   ;;  %s1180_s5 = inlined_call_operand.hbm [shape: f32[2,8,256], index: 5, kind: output, shape index: {}]  }
   0x1   :  { %12 = vsyncpa [#allocation4 + $0x1], 0  ;;  %s994_s18 = smov 0   ;;  %s996_s19 = smov 0  }
   0x2   :  { %s998_s20 = smov 0   ;;  %s1000_s21 = smov 0  }
   0x3   :  { %s1002_s22 = smov 0   ;;  %s1004_s23 = smov 0  }
   0x4 LB: > { %s778_s24 = sadd.s32 4294967295, %s952_s23   ;;  %s779_s25 = sadd.s32 4294967294, %s952_s23   ;;  %s952_s23 = sphi %s1004_s23, %s18_s23   ;;  %s948_s22 = sphi %s1002_s22, %s1187_s22   ;;  %s944_s21 = sphi %s1000_s21, %s1186_s21   ;;  %s940_s20 = sphi %s998_s20, %s1185_s20   ;;  %s936_s19 = sphi %s996_s19, %s1184_s19   ;;  %s932_s18 = sphi %s994_s18, %s1183_s18  }
   0x5   : > { %s30_s26 = sadd.s32 1, %s948_s22  ;;  %s159_s27 = sadd.s32 1, %s940_s20 }
   0x6   : > { %p32_p0 = scmp.ge.s32.totalorder %s30_s26, 2  ;;  %p169_p1 = scmp.ne.s32.totalorder %s940_s20, %s936_s19 }
   0x7   : > { %p170_p2 = scmp.eq.s32.totalorder %s778_s24, 1  ;;  %p175_p3 = scmp.ne.s32.totalorder %s936_s19, %s932_s18 }
   0x8   : > { %s1189_s26 = smov (%p32_p0, %s30_s26), 0  ;;  %p176_p5 = scmp.eq.s32.totalorder %s779_s25, 1 }
   0x9   : > { %p1034_p4 = por %p170_p2, %p169_p1  ;;  %s154_s29 = ssub.s32 %s948_s22, %s1189_s26 }
   0xa   : > { %p784_p6 = scmp.ge.s32.totalorder %s952_s23, 1  ;;  %p157_p7 = scmp.eq.s32.totalorder %s154_s29, 0 }
   0xb   : > { %p1041_p8 = por %p176_p5, %p175_p3  ;;  %p222_p9 = scmp.lt.s32.totalorder %s952_s23, 3 }
   0xc   : > { %s1047_s6 = scalar_select %p157_p7, %s940_s20, %s159_s27  }
   0xd   : > { %p223_p10 = pnand %p784_p6, %p222_p9 }
   0xe   : > { %p258_p11 = scmp.lt.s32.totalorder (!%p223_p10), %s944_s21, 1  ;;  %s956_s17 = smov (!%p223_p10), 127  }
   0xf   : > { %226 = sbr.rel (%p223_p10) target bundleno = 475 (0x1db), region = 40  ;;  %s957_s24 = smov (!%p223_p10), 126  }
  0x10   : > { %s958_s25 = smov (!%p223_p10), 112   ;;  %s959_s27 = smov (!%p223_p10), 111  }
  0x11   : > { %s960_s29 = smov (!%p223_p10), 110   ;;  %s961_s7 = smov (!%p223_p10), 96  }
  0x12   : > { %s962_s8 = smov (!%p223_p10), 95   ;;  %s963_s9 = smov (!%p223_p10), 94  }
  0x13   : > { %s255_s14 = sand.u32 (!%p223_p10), 1, %s936_s19  }
  0x14   : > { %v788_v0 = vld [vmem:[%s1176_s1 + $0x8] sm:$0xf]  ;;  %v281_v1 = vld [vmem:[%s1176_s1] sm:$0xf]  ;;  %v954_v2 = vmov 0   ;;  %s259_s12 = scalar_select %p258_p11, %s944_s21, 1 }
  0x15   : > { %872 = vset.pattern.permute.xlu1 %v954_v2  ;;  %871 = vset.pattern.permute.xlu0 %v954_v2  ;;  %v790_v3 = vld [vmem:[%s1176_s1 + $0x10] sm:$0xf]  ;;  %v789_v4 = vld [vmem:[%s1176_s1 + $0xc] sm:$0xf]  ;;  %v787_v5 = vld [vmem:[%s1176_s1 + $0x4] sm:$0xf] }
  0x16   : > { %343 = vperm.xlu1 %872, %v788_v0   ;;  %285 = vperm.xlu0 %871, %v281_v1   ;;  %v791_v6 = vld [vmem:[%s1176_s1 + $0x14] sm:$0xf]  ;;  %v793_v7 = vld [vmem:[%s1176_s1 + $0x1c] sm:$0xf]  ;;  %v792_v8 = vld [vmem:[%s1176_s1 + $0x18] sm:$0xf] }
  0x17   : > { %873 = vset.pattern.permute.xlu2 %v954_v2  ;;  %v794_v9 = vld [vmem:[%s1176_s1 + $0x20] sm:$0xf]  ;;  %v955_v12 = vmov 839922192   ;;  %s805_s13 = smul.u32 12, %s259_s12  ;;  %vm330_vm0 = vcmask 1039360  }
  0x18   : > { %415 = vperm.xlu2 %873, %v790_v3   ;;  %v275_v10 = vld [vmem:[%s1177_s2] sm:$0xf]  ;;  %v288_v13 = vunpack.c.l.s4 %v955_v12  ;;  %vm366_vm1 = vcmask 1031168   ;;  %vm402_vm2 = vcmask 916480   ;;  %vm438_vm3 = vcmask 908288   ;;  %s785_s15 = sshll.u32 %s255_s14, 4 }
  0x19   : > { %s1088_s16 = scalar_lea.vmem %s1175_s0, %s805_s13  ;;  %vm474_vm4 = vcmask 900096   ;;  %vm510_vm5 = vcmask 785408   ;;  %vm546_vm6 = vcmask 777216   ;;  %vm582_vm7 = vcmask 769024   ;;  %s894_s12 = scalar_lea.hbm %s1180_s5, 32 }
  0x1a   : > { %v1083_v15 = vunpack.c.0.s8 %v288_v13  ;;  %v1091_v16 = vld [vmem:[%s1088_s16] sm:$0xff]  ;;  %v556_v20 = vld [vmem:[%s1088_s16 + $0x8] sm:$0xf]  ;;  %vm592_vm8 = vcmask 1043456   ;;  %vm608_vm9 = vcmask 31744  }
  0x1b   : > { %v304_v26 = vld [vmem:[%s1088_s16 + $0x8] sm:$0xf] }
  0x1c   : > { %v340_v34 = vld [vmem:[%s1088_s16 + $0x8] sm:$0xf] }
  0x1d   : > { %v376_v42 = vld [vmem:[%s1088_s16 + $0x8] sm:$0xf] }
  0x1e   : > { %379 = vperm.xlu1 %872, %v789_v4   ;;  %307 = vperm.xlu0 %871, %v787_v5   ;;  %v412_v49 = vld [vmem:[%s1088_s16 + $0x8] sm:$0xf] }
  0x1f   : > { %v448_v56 = vld [vmem:[%s1088_s16 + $0x8] sm:$0xf] }
  0x20   : > { %451 = vperm.xlu2 %873, %v791_v6   ;;  %v484_v0 = vld [vmem:[%s1088_s16 + $0x8] sm:$0xf] }
  0x26   : > { %523 = vperm.xlu1 %872, %v793_v7   ;;  %487 = vperm.xlu0 %871, %v792_v8   ;;  %v520_v8 = vld [vmem:[%s1088_s16 + $0x8] sm:$0xf]  ;;  %s804_s16 = sshll.u32 %s944_s21, 4 }
  0x28   : > { %559 = vperm.xlu2 %873, %v794_v9  }
  0x2e   : > { %278 = vperm.xlu0 %871, %v275_v10  }
  0x72   : > { %v416_v11 = vpop.permute.xlu2 %415 }
  0x73   : > { %v420_v48 = vperm.slane %v416_v11, %v1083_v15 }
  0x75   : > { %v422_v50 = vmul.f32 %v420_v48, %v1091_v16  ;;  %v423_v51 = vmul.f32 %v420_v48, %v412_v49 }
  0x7a   : > { %v1081_v14 = vpop.permute.xlu2 %451 }
  0x7b   : > { %v456_v55 = vperm.slane %v1081_v14, %v1083_v15 }
  0x7d   : > { %v458_v57 = vmul.f32 %v456_v55, %v1091_v16  ;;  %v459_v59 = vmul.f32 %v456_v55, %v448_v56 }
  0x82   : > { %v560_v19 = vpop.permute.xlu2 %559 }
  0x83   : > { %v564_v21 = vperm.slane %v560_v19, %v1083_v15 }
  0x85   : > { %v1098_v23 = vmul.f32 %v564_v21, %v1091_v16  ;;  %v1100_v24 = vmul.f32 %v564_v21, %v556_v20  ;;  %v598_v20 = vld [vmem:[%s1179_s4] sm:$0xff] }
  0x88   : > { %v286_v17 = vpop.permute.xlu0 %285  ;;  %v344_v30 = vpop.permute.xlu1 %343 }
  0x89   : > { %v290_v18 = vperm.slane %v286_v17, %v1083_v15  ;;  %v348_v33 = vperm.slane %v344_v30, %v1083_v15 }
  0x8b   : > { %v292_v22 = vmul.f32 %v1091_v16, %v290_v18  ;;  %v350_v35 = vmul.f32 %v348_v33, %v1091_v16  ;;  %v351_v36 = vmul.f32 %v348_v33, %v340_v34 }
  0x8d   : > { %294 = vst [vmem:[#allocation1] ss:$2 sm:$0xff] %v292_v22 }
  0x90   : > { %v308_v25 = vpop.permute.xlu0 %307  ;;  %v380_v40 = vpop.permute.xlu1 %379 }
  0x91   : > { %v312_v27 = vperm.slane %v308_v25, %v1083_v15  ;;  %v384_v41 = vperm.slane %v380_v40, %v1083_v15 }
  0x93   : > { %v314_v28 = vmul.f32 %v1091_v16, %v312_v27  ;;  %v315_v29 = vmul.f32 %v312_v27, %v304_v26  ;;  %v386_v43 = vmul.f32 %v384_v41, %v1091_v16  ;;  %v387_v44 = vmul.f32 %v384_v41, %v376_v42 }
  0x94   : > { %v1105_v31 = vld.sshfl [vmem:[#allocation1] sm:$0xff pattern:$0x75316420]  ;;  %v1107_v32 = vld.sshfl [vmem:[#allocation1 + $0x8] sm:$0xff pattern:$0x75316420] }
  0x95   : > { %318 = vst [vmem:[#allocation1] ss:$2 sm:$0xff] %v314_v28 }
  0x96   : > { %320 = vst [vmem:[#allocation1 + $0x10] ss:$2 sm:$0xff] %v315_v29 }
  0x98   : > { %v488_v58 = vpop.permute.xlu0 %487  ;;  %v524_v2 = vpop.permute.xlu1 %523 }
  0x99   : > { %v492_v63 = vperm.slane %v488_v58, %v1083_v15  ;;  %v528_v7 = vperm.slane %v524_v2, %v1083_v15 }
  0x9b   : > { %v494_v1 = vmul.f32 %v492_v63, %v1091_v16  ;;  %v495_v3 = vmul.f32 %v492_v63, %v484_v0  ;;  %v530_v9 = vmul.f32 %v528_v7, %v1091_v16  ;;  %v531_v10 = vmul.f32 %v528_v7, %v520_v8 }
  0x9c   : > { %v321_v37 = vld.sshfl [vmem:[#allocation1] sm:$0xff pattern:$0x75316420]  ;;  %v322_v38 = vld.sshfl [vmem:[#allocation1 + $0x8] sm:$0xff pattern:$0x75316420] }
  0x9d   : > { %v323_v39 = vld.sshfl [vmem:[#allocation1 + $0x10] sm:$0xff pattern:$0x75316420]  ;;  %354 = vst [vmem:[#allocation1] ss:$2 sm:$0xff] %v350_v35  ;;  %326 = vrot.lane.b32.xlu1 %v322_v38, %s956_s17  ;;  %324 = vrot.lane.b32.xlu0 %v321_v37, %s956_s17 }
  0x9e   : > { %356 = vst [vmem:[#allocation1 + $0x10] ss:$2 sm:$0xff] %v351_v36  ;;  %328 = vrot.lane.b32.xlu2 %v323_v39, %s956_s17 }
  0xa0   : > { %v279_v22 = vpop.permute.xlu0 %278 }
  0xa4   : > { %v358_v45 = vld.sshfl [vmem:[#allocation1 + $0x8] sm:$0xff pattern:$0x75316420]  ;;  %v357_v46 = vld.sshfl [vmem:[#allocation1] sm:$0xff pattern:$0x75316420] }
  0xa5   : > { %v359_v47 = vld.sshfl [vmem:[#allocation1 + $0x10] sm:$0xff pattern:$0x75316420]  ;;  %362 = vrot.lane.b32.xlu1 %v358_v45, %s957_s24  ;;  %360 = vrot.lane.b32.xlu0 %v357_v46, %s957_s24  ;;  %390 = vst [vmem:[#allocation1] ss:$2 sm:$0xff] %v386_v43  ;;  %v300_v43 = vadd.f32 %v1107_v32, %v279_v22  ;;  %v299_v46 = vadd.f32 %v1105_v31, %v279_v22 }
  0xa6   : > { %392 = vst [vmem:[#allocation1 + $0x10] ss:$2 sm:$0xff] %v387_v44  ;;  %364 = vrot.lane.b32.xlu2 %v359_v47, %s957_s24 }
  0xac   : > { %v394_v52 = vld.sshfl [vmem:[#allocation1 + $0x8] sm:$0xff pattern:$0x75316420]  ;;  %v393_v53 = vld.sshfl [vmem:[#allocation1] sm:$0xff pattern:$0x75316420] }
  0xad   : > { %v395_v54 = vld.sshfl [vmem:[#allocation1 + $0x10] sm:$0xff pattern:$0x75316420]  ;;  %398 = vrot.lane.b32.xlu1 %v394_v52, %s958_s25  ;;  %396 = vrot.lane.b32.xlu0 %v393_v53, %s958_s25  ;;  %426 = vst [vmem:[#allocation1] ss:$2 sm:$0xff] %v422_v50 }
  0xae   : > { %400 = vrot.lane.b32.xlu2 %v395_v54, %s958_s25  ;;  %428 = vst [vmem:[#allocation1 + $0x10] ss:$2 sm:$0xff] %v423_v51  ;;  %s673_s25 = scalar_lea.hbm %s1180_s5, %s804_s16 }
  0xb4   : > { %v430_v60 = vld.sshfl [vmem:[#allocation1 + $0x8] sm:$0xff pattern:$0x75316420]  ;;  %v429_v61 = vld.sshfl [vmem:[#allocation1] sm:$0xff pattern:$0x75316420] }
  0xb5   : > { %v431_v62 = vld.sshfl [vmem:[#allocation1 + $0x10] sm:$0xff pattern:$0x75316420]  ;;  %434 = vrot.lane.b32.xlu1 %v430_v60, %s959_s27  ;;  %432 = vrot.lane.b32.xlu0 %v429_v61, %s959_s27  ;;  %462 = vst [vmem:[#allocation1] ss:$2 sm:$0xff] %v458_v57 }
  0xb6   : > { %436 = vrot.lane.b32.xlu2 %v431_v62, %s959_s27  ;;  %464 = vst [vmem:[#allocation1 + $0x10] ss:$2 sm:$0xff] %v459_v59  ;;  %s257_s27 = scalar_lea.vmem [#allocation3], %s785_s15 }
  0xbc   : > { %v466_v4 = vld.sshfl [vmem:[#allocation1 + $0x8] sm:$0xff pattern:$0x75316420]  ;;  %v465_v5 = vld.sshfl [vmem:[#allocation1] sm:$0xff pattern:$0x75316420] }
  0xbd   : > { %v467_v6 = vld.sshfl [vmem:[#allocation1 + $0x10] sm:$0xff pattern:$0x75316420]  ;;  %470 = vrot.lane.b32.xlu1 %v466_v4, %s960_s29  ;;  %468 = vrot.lane.b32.xlu0 %v465_v5, %s960_s29  ;;  %498 = vst [vmem:[#allocation1] ss:$2 sm:$0xff] %v494_v1 }
  0xbe   : > { %472 = vrot.lane.b32.xlu2 %v467_v6, %s960_s29  ;;  %500 = vst [vmem:[#allocation1 + $0x10] ss:$2 sm:$0xff] %v495_v3  ;;  %s675_s29 = sshll.u32 %s257_s27, 4  ;;  %s676_s29 = int_to_ptr.vmem [resolvable:$true] %s675_s29 }
  0xc4   : > { %v502_v11 = vld.sshfl [vmem:[#allocation1 + $0x8] sm:$0xff pattern:$0x75316420]  ;;  %v501_v12 = vld.sshfl [vmem:[#allocation1] sm:$0xff pattern:$0x75316420] }
  0xc5   : > { %v503_v13 = vld.sshfl [vmem:[#allocation1 + $0x10] sm:$0xff pattern:$0x75316420]  ;;  %506 = vrot.lane.b32.xlu1 %v502_v11, %s961_s7  ;;  %504 = vrot.lane.b32.xlu0 %v501_v12, %s961_s7  ;;  %534 = vst [vmem:[#allocation1] ss:$2 sm:$0xff] %v530_v9 }
  0xc6   : > { %508 = vrot.lane.b32.xlu2 %v503_v13, %s961_s7  ;;  %536 = vst [vmem:[#allocation1 + $0x10] ss:$2 sm:$0xff] %v531_v10  ;;  %s677_s7 = sshll.u32 %s673_s25, 4  ;;  %s678_s7 = int_to_ptr.hbm [resolvable:$true] %s677_s7 }
  0xcc   : > { %v538_v14 = vld.sshfl [vmem:[#allocation1 + $0x8] sm:$0xff pattern:$0x75316420]  ;;  %v537_v17 = vld.sshfl [vmem:[#allocation1] sm:$0xff pattern:$0x75316420] }
  0xcd   : > { %v539_v18 = vld.sshfl [vmem:[#allocation1 + $0x10] sm:$0xff pattern:$0x75316420]  ;;  %542 = vrot.lane.b32.xlu1 %v538_v14, %s962_s8  ;;  %540 = vrot.lane.b32.xlu0 %v537_v17, %s962_s8  ;;  %570 = vst [vmem:[#allocation1] ss:$2 sm:$0xff] %v1098_v23 }
  0xce   : > { %544 = vrot.lane.b32.xlu2 %v539_v18, %s962_s8  ;;  %572 = vst [vmem:[#allocation1 + $0x10] ss:$2 sm:$0xff] %v1100_v24  ;;  %s660_s8 = scalar_lea.sflag [#allocation4], %s255_s14 }
  0xd4   : > { %v574_v15 = vld.sshfl [vmem:[#allocation1 + $0x8] sm:$0xff pattern:$0x75316420]  ;;  %v573_v16 = vld.sshfl [vmem:[#allocation1] sm:$0xff pattern:$0x75316420] }
  0xd5   : > { %v575_v19 = vld.sshfl [vmem:[#allocation1 + $0x10] sm:$0xff pattern:$0x75316420]  ;;  %578 = vrot.lane.b32.xlu1 %v574_v15, %s963_s9  ;;  %576 = vrot.lane.b32.xlu0 %v573_v16, %s963_s9  ;;  %v596_v16 = vld [vmem:[%s1178_s3] sm:$0xff] }
  0xd6   : > { %580 = vrot.lane.b32.xlu2 %v575_v19, %s963_s9  ;;  %s888_s9 = sshra.s32 %s678_s7, 4  ;;  %s889_s9 = int_to_ptr.hbm [resolvable:$true] %s888_s9 }
  0xd7   : > { %s890_s21 = scalar_lea.hbm %s889_s9, 16  ;;  %p895_p1 = scmp.lt.s32.totalorder %s889_s9, %s1180_s5 }
  0xd8   : > { %p891_p12 = scmp.ne.s32.totalorder %s889_s9, %s890_s21  ;;  %p896_p2 = scmp.lt.s32.totalorder %s894_s12, %s890_s21 }
  0xda   : > { %p892_p13 = pnand %p891_p12, %p1034_p4  ;;  %p897_p3 = por %p896_p2, %p895_p1 }
  0xdc   : > { %p893_p0 = pneg %p892_p13 }
  0xdd   : > { %601 = vperm.xlu1 %872, %v598_v20  }
  0xde   : > { %p898_p5 = pnand %p897_p3, %p893_p0 }
  0xf8   : > { %v329_v21 = vpop.permute.xlu2 %328 }
 0x100   : > { %v365_v25 = vpop.permute.xlu2 %364 }
 0x108   : > { %v401_v27 = vpop.permute.xlu2 %400 }
 0x10f   : > { %v327_v26 = vpop.permute.xlu1 %326  ;;  %v325_v23 = vpop.permute.xlu0 %324 }
 0x110   : > { %v437_v29 = vpop.permute.xlu2 %436  ;;  %v332_v42 = vsel %vm330_vm0, %v327_v26, %v329_v21  ;;  %v331_v44 = vsel %vm330_vm0, %v325_v23, %v327_v26 }
 0x111   : > { %v336_v47 = vadd.f32 %v332_v42, %v300_v43  ;;  %v335_v51 = vadd.f32 %v331_v44, %v299_v46 }
 0x117   : > { %v363_v28 = vpop.permute.xlu1 %362  ;;  %v361_v24 = vpop.permute.xlu0 %360 }
 0x118   : > { %v473_v36 = vpop.permute.xlu2 %472  ;;  %v368_v45 = vsel %vm366_vm1, %v363_v28, %v365_v25  ;;  %v367_v48 = vsel %vm366_vm1, %v361_v24, %v363_v28 }
 0x119   : > { %v372_v52 = vadd.f32 %v368_v45, %v336_v47  ;;  %v371_v55 = vadd.f32 %v367_v48, %v335_v51 }
 0x11f   : > { %v399_v30 = vpop.permute.xlu1 %398  ;;  %v397_v33 = vpop.permute.xlu0 %396 }
 0x120   : > { %v509_v39 = vpop.permute.xlu2 %508  ;;  %v404_v49 = vsel %vm402_vm2, %v399_v30, %v401_v27  ;;  %v403_v53 = vsel %vm402_vm2, %v397_v33, %v399_v30 }
 0x121   : > { %v408_v56 = vadd.f32 %v404_v49, %v372_v52  ;;  %v407_v60 = vadd.f32 %v403_v53, %v371_v55 }
 0x127   : > { %v435_v34 = vpop.permute.xlu1 %434  ;;  %v433_v35 = vpop.permute.xlu0 %432 }
 0x128   : > { %v545_v50 = vpop.permute.xlu2 %544  ;;  %v440_v54 = vsel %vm438_vm3, %v435_v34, %v437_v29  ;;  %v439_v58 = vsel %vm438_vm3, %v433_v35, %v435_v34 }
 0x129   : > { %v444_v61 = vadd.f32 %v440_v54, %v408_v56  ;;  %v443_v63 = vadd.f32 %v439_v58, %v407_v60 }
 0x12f   : > { %v471_v37 = vpop.permute.xlu1 %470  ;;  %v469_v38 = vpop.permute.xlu0 %468 }
 0x130   : > { %v476_v59 = vsel %vm474_vm4, %v471_v37, %v473_v36  ;;  %v475_v31 = vsel %vm474_vm4, %v469_v38, %v471_v37  ;;  %v581_v5 = vpop.permute.xlu2 %580 }
 0x131   : > { %v480_v0 = vadd.f32 %v476_v59, %v444_v61  ;;  %v479_v3 = vadd.f32 %v475_v31, %v443_v63 }
 0x137   : > { %v507_v40 = vpop.permute.xlu1 %506  ;;  %v505_v41 = vpop.permute.xlu0 %504 }
 0x138   : > { %v512_v62 = vsel %vm510_vm5, %v507_v40, %v509_v39  ;;  %v511_v1 = vsel %vm510_vm5, %v505_v41, %v507_v40 }
 0x139   : > { %v516_v4 = vadd.f32 %v512_v62, %v480_v0  ;;  %v515_v7 = vadd.f32 %v511_v1, %v479_v3 }
 0x13f   : > { %v543_v57 = vpop.permute.xlu1 %542  ;;  %v541_v32 = vpop.permute.xlu0 %540 }
 0x140   : > { %v548_v2 = vsel %vm546_vm6, %v543_v57, %v545_v50  ;;  %v547_v6 = vsel %vm546_vm6, %v541_v32, %v543_v57 }
 0x141   : > { %v552_v8 = vadd.f32 %v548_v2, %v516_v4  ;;  %v551_v13 = vadd.f32 %v547_v6, %v515_v7 }
 0x147   : > { %v579_v9 = vpop.permute.xlu1 %578  ;;  %v577_v10 = vpop.permute.xlu0 %576 }
 0x148   : > { %v584_v11 = vsel %vm582_vm7, %v579_v9, %v581_v5  ;;  %v583_v12 = vsel %vm582_vm7, %v577_v10, %v579_v9 }
 0x149   : > { %v588_v14 = vadd.f32 %v584_v11, %v552_v8  ;;  %v587_v18 = vadd.f32 %v583_v12, %v551_v13 }
 0x14b   : > { %v591_v17 = vrot.slane %v588_v14, 4 }
 0x14d   : > { %v593_v15 = vsel %vm592_vm8, %v587_v18, %v591_v17 }
 0x14e   : > { %605 = vst [vmem:[#allocation1] ss:$2 sm:$0xff] %v593_v15 }
 0x14f   : > { %v602_v21 = vpop.permute.xlu1 %601 }
 0x155   : > { %v606_v19 = vld.sshfl [vmem:[#allocation1] sm:$0xff pattern:$0x75316420]  ;;  %v607_v20 = vld.sshfl [vmem:[#allocation1 + $0x8] sm:$0xff pattern:$0x75316420] }
 0x156   : > { %795 = vmatpush.msk.msra.mxu0 %vm592_vm8, %v606_v19  ;;  %797 = vmatpush.msk.msra.mxu1 %vm592_vm8, %v607_v20 }
 0x157   : > { %796 = vmatmul.msk.f32.vlgmr.msra.gmra.mxu0 %vm608_vm9, %v596_v16  ;;  %798 = vmatmul.msk.f32.vlgmr.msra.gmra.mxu1 %vm608_vm9, %v596_v16 }
 0x1d4   : > { %v634_v22 = vpop.f32.mrf.mxu0  ;;  %v654_v25 = vpop.f32.mrf.mxu1 }
 0x1d5   : > { %v635_v26 = vadd.f32 %v634_v22, %v602_v21  ;;  %v655_v23 = vadd.f32 %v654_v25, %v602_v21 }
 0x1d7   : > { %657 = vst [vmem:[%s257_s27] sm:$0xff] %v635_v26 }
 0x1d8   : > { %658 = vst [vmem:[%s257_s27 + $0x8] sm:$0xff] %v655_v23 }
 0x1d9   : > { %901 = shalt.err (!%p898_p5)
}
 0x1da   : > { %806 = dma.vmem_to_hbm [thread:$0]  (%p1034_p4), %s676_s29, 256, %s678_s7, %s660_s8  }
 0x1db PF: > { %p812_p6 = scmp.ge.s32.totalorder %s952_s23, 2  ;;  %s689_s14 = sand.u32 1, %s932_s18  }
 0x1dc   : > { %s690_s16 = scalar_lea.sflag [#allocation4], %s689_s14 }
 0x1dd   : > { %p809_p7 = pnand %p812_p6, %p1041_p8 }
 0x1df   : > { %p810_p9 = pneg %p809_p7 }
 0x1e1   : > { %927 = dma.done.wait (%p810_p9), %s690_s16, 256  }
 0x1e2   : > { %929 = vsyncadd (%p810_p9), %s690_s16, 4294967040  ;;  %s18_s23 = sadd.s32 1, %s952_s23   ;;  %s1183_s18 = smov %s936_s19 }
 0x1e3   : > { %p15_p10 = scmp.ge.s32.totalorder %s18_s23, 4   ;;  %s1184_s19 = smov %s940_s20 }
 0x1e4   : > { %s1185_s20 = smov %s1047_s6  ;;  %s1186_s21 = smov %s948_s22 }
 0x1e5   : > { %s1187_s22 = smov %s1189_s26  ;;  %17 = sbr.rel (!%p15_p10) target bundleno = 4 (0x4), region = 101 }
 0x1ea   :  { %696 = vsyncpa [#allocation4], 1 }
 0x1eb   :  { %698 = vsyncpa [#allocation4 + $0x1], 1 }

</bundles_post_ra>
